<compile_context>
chip_gen: v5e
topology: v5e:2x2
jax: 0.10.0
libtpu: 0.0.40
codegen_flags: <defaults>
</compile_context>

<pallas_src>
import functools

import jax
import jax.numpy as jnp
from jax.experimental import pallas as pl
from jax.experimental.pallas import tpu as pltpu


def _attention_kernel(v_ref, hq_ref, w1v_ref, w2_ref, out_ref, *, k_true):
    """One grid step processes Bt batches (Bt*Kp flattened object rows).

    v_ref  : (Bt*Kp, vdim) bf16  flattened (batch, padded-object) rows
    hq_ref : (Bt, H)       f32   q @ W1_q + b1, precomputed in the wrapper
    w1v_ref: (vdim, H)     bf16  grid-invariant, single-buffered
    w2_ref : (1, H)        f32   Linear(num_hid, 1) weight stored as a row
    out_ref: (Bt, Kp)      f32   softmax weights, lane-dense over Kp
    """
    bt, kp = out_ref.shape
    h_dim = w2_ref.shape[-1]

    # v-path: one big MXU matmul, M = Bt*Kp rows, bf16 in / f32 accumulate.
    hv = jnp.dot(v_ref[...], w1v_ref[...],
                 preferred_element_type=jnp.float32)            # (Bt*Kp, H)

    # joint_repr = ReLU([v ; q] @ W1 + b1); the q/b1 contribution arrives
    # precomputed per batch and is broadcast over the Kp objects.  Kp is a
    # multiple of 8, so this reshape only regroups leading (sublane) rows and
    # is layout-preserving.
    joint = jnp.maximum(hv.reshape(bt, kp, h_dim) + hq_ref[...][:, None, :], 0.0)

    # logits = joint @ w2 as a VPU multiply + lane reduction over H (keeps the
    # MXU free).  The scalar bias b2 is dropped: softmax is shift-invariant.
    logits = jnp.sum(joint * w2_ref[...].reshape(1, 1, h_dim), axis=-1)  # (Bt, Kp)

    # Mask padded object columns (k >= k_true) before the softmax: padded v
    # rows are zero but still produce hq+b1-driven logits otherwise.
    col = jax.lax.broadcasted_iota(jnp.int32, (1, kp), 1)
    logits = jnp.where(col < k_true, logits, -1e30)

    # softmax over the (padded) object axis, numerically stabilized.
    m = jnp.max(logits, axis=-1, keepdims=True)
    e = jnp.exp(logits - m)
    denom = jnp.sum(e, axis=-1, keepdims=True)
    out_ref[...] = (e * pl.reciprocal(denom, approx=True)).astype(out_ref.dtype)


def _vmem_limit_bytes():
    """~3/4 of physical per-core VMEM, capped at 96 MiB, floored at 32 MiB.
    -> ~48 MiB on v7x (64 MiB physical), 96 MiB on v5e/v6e (128 MiB)."""
    cap = 128 * 1024 * 1024
    try:
        cap = int(getattr(pltpu.get_tpu_info(), "vmem_capacity_bytes", cap))
    except Exception:
        pass
    return max(32 * 1024 * 1024, min(96 * 1024 * 1024, (cap * 3) // 4))


def _pick_block_b(batch, k_pad, target_rows=2048, min_steps=4):
    """Pick Bt (multiple of 8): Bt*Kp <= target_rows, while keeping at least
    `min_steps` grid steps so v7x megacore gets >= 2 steps per core and the
    block pipeline actually overlaps DMA with compute."""
    bt = max(8, (target_rows // max(k_pad, 1)) // 8 * 8)
    bt_for_steps = -(-batch // min_steps)                 # ceil(B / min_steps)
    bt_for_steps = max(8, -(-bt_for_steps // 8) * 8)      # round up to mult of 8
    return min(bt, bt_for_steps)


def attention_forward(v, q, w1v, w1q, b1, w2, b2=None, *, block_b=None,
                      target_rows=2048):
    """v: [B, K, vdim], q: [B, qdim] -> softmax attention weights [B, K, 1]."""
    B, K, vdim = v.shape
    H = w1v.shape[1]
    del b2  # softmax(logits + c) == softmax(logits): scalar bias is a no-op.

    # Pad K up to a multiple of 8 so the in-kernel reshape is layout-preserving.
    Kp = -(-K // 8) * 8
    if block_b is None:
        block_b = _pick_block_b(B, Kp, target_rows=target_rows)
    # Pad B so the grid tiles evenly (rows are independent; padded rows are
    # computed and discarded).
    B_pad = -(-B // block_b) * block_b
    grid_b = B_pad // block_b
    rows = block_b * Kp

    # q-path hoisted out of the kernel: tiny matmul, computed once in f32.
    hq = (q.astype(jnp.float32) @ w1q.astype(jnp.float32)
          + b1.reshape(1, H).astype(jnp.float32))                    # (B, H)

    v_p = jnp.pad(v, ((0, B_pad - B), (0, Kp - K), (0, 0)))
    hq_p = jnp.pad(hq, ((0, B_pad - B), (0, 0)))

    # bf16 matmul inputs (f32 accumulation in-kernel); w2 stays f32.
    v_flat = v_p.reshape(B_pad * Kp, vdim).astype(jnp.bfloat16)
    w1v_bf = w1v.astype(jnp.bfloat16)
    w2_row = w2.reshape(1, H).astype(jnp.float32)

    kernel = functools.partial(_attention_kernel, k_true=K)

    out2d = pl.pallas_call(
        kernel,
        out_shape=jax.ShapeDtypeStruct((B_pad, Kp), jnp.float32),
        grid_spec=pltpu.PrefetchScalarGridSpec(
            num_scalar_prefetch=0,
            grid=(grid_b,),
            in_specs=[
                pl.BlockSpec((rows, vdim), lambda i: (i, 0)),        # v rows
                pl.BlockSpec((block_b, H), lambda i: (i, 0)),        # hq
                pl.BlockSpec((vdim, H), lambda i: (0, 0),            # W1_v
                             pipeline_mode=pl.Buffered(1)),          # invariant
                pl.BlockSpec((1, H), lambda i: (0, 0),               # w2 row
                             pipeline_mode=pl.Buffered(1)),          # invariant
            ],
            out_specs=pl.BlockSpec((block_b, Kp), lambda i: (i, 0)),  # lane-dense
        ),
        compiler_params=pltpu.CompilerParams(
            dimension_semantics=("parallel",),     # megacore-shardable on v7x
            vmem_limit_bytes=_vmem_limit_bytes(),  # generation-aware
        ),
    )(v_flat, hq_p, w1v_bf, w2_row)

    return out2d[:B, :K, None]   # [B, K, 1] like the PyTorch module


def _weight_norm(v_weight, g):
    """weight_norm(..., dim=None): W = g * V / ||V||_F (g is a scalar)."""
    return g * v_weight / jnp.sqrt(jnp.sum(v_weight * v_weight))


def _reference(v, q, w1v, w1q, b1, w2, b2):
    """Plain-JAX f32 reference matching the PyTorch forward exactly."""
    B, K, _ = v.shape
    qr = jnp.broadcast_to(q[:, None, :], (B, K, q.shape[1]))
    vq = jnp.concatenate([v, qr], axis=2)
    w1 = jnp.concatenate([w1v, w1q], axis=0)              # (vdim+qdim, H)
    joint = jax.nn.relu(vq @ w1 + b1.reshape(1, 1, -1))
    logits = joint @ w2.reshape(-1, 1) + b2.reshape(1, 1, 1)
    return jax.nn.softmax(logits, axis=1)


if __name__ == "__main__":
    # Small shapes consistent with forward(): v [B, K, vdim], q [B, qdim].
    # B=30 / K=12 deliberately exercise both the batch padding (30 -> 32) and
    # the object padding + masking (12 -> 16) paths.
    B, K, VDIM, QDIM, NUM_HID = 30, 12, 64, 32, 128

    key = jax.random.PRNGKey(0)
    kv, kq, kw1, kb1, kw2, kb2, kg1, kg2 = jax.random.split(key, 8)

    v = jax.random.normal(kv, (B, K, VDIM), jnp.float32)
    q = jax.random.normal(kq, (B, QDIM), jnp.float32)

    # weight_norm(dim=None) parametrization applied explicitly in glue code;
    # weights stored as [in_features, out_features].
    w1_raw = jax.random.normal(kw1, (VDIM + QDIM, NUM_HID), jnp.float32) * 0.1
    g1 = 1.0 + 0.1 * jax.random.normal(kg1, ())
    w1_eff = _weight_norm(w1_raw, g1)
    b1 = jax.random.normal(kb1, (NUM_HID,), jnp.float32) * 0.1

    w2_raw = jax.random.normal(kw2, (NUM_HID, 1), jnp.float32) * 0.1
    g2 = 1.0 + 0.1 * jax.random.normal(kg2, ())
    w2_eff = _weight_norm(w2_raw, g2)
    b2 = jax.random.normal(kb2, (1,), jnp.float32) * 0.1

    # Split W1 into the v-part and q-part (equivalent to concat-then-matmul).
    w1v, w1q = w1_eff[:VDIM], w1_eff[VDIM:]

    out = attention_forward(v, q, w1v, w1q, b1, w2_eff, b2)
    out = jax.block_until_ready(out)

    ref = _reference(v, q, w1v, w1q, b1, w2_eff, b2)
    assert out.shape == (B, K, 1)
    # bf16 matmul inputs + approx reciprocal -> compare against the exact f32
    # reference with a bf16-appropriate tolerance.
    assert jnp.allclose(out, ref, atol=2e-2, rtol=2e-2), float(
        jnp.max(jnp.abs(out - ref)))
    # softmax over K sums to ~1 per batch (approx reciprocal => ~1e-3 slack).
    assert jnp.allclose(jnp.sum(out, axis=1), 1.0, atol=5e-3)

    print("KERNEL_OK")
</pallas_src>

<mosaic_0001>
module attributes {stable_mosaic.version = 11 : i64} {
  func.func @_attention_kernel(%arg0: i32, %arg1: memref<128x64xbf16, #tpu.memory_space<vmem>>, %arg2: memref<8x128xf32, #tpu.memory_space<vmem>>, %arg3: memref<64x128xbf16, #tpu.memory_space<vmem>>, %arg4: memref<1x128xf32, #tpu.memory_space<vmem>>, %arg5: memref<8x16xf32, #tpu.memory_space<vmem>>) attributes {dimension_semantics = [#tpu.dimension_semantics<parallel>], iteration_bounds = array<i64: 4>, scalar_prefetch = 0 : i64, scratch_operands = 0 : i64, tpu.core_type = #tpu.core_type<tc>, window_params = [{transform_indices = @transform_0, window_bounds = array<i64: 128, 64>}, {transform_indices = @transform_1, window_bounds = array<i64: 8, 128>}, {pipeline_mode = #tpu.pipeline_mode<synchronous>, transform_indices = @transform_2, window_bounds = array<i64: 64, 128>}, {pipeline_mode = #tpu.pipeline_mode<synchronous>, transform_indices = @transform_3, window_bounds = array<i64: 1, 128>}, {transform_indices = @transform_4, window_bounds = array<i64: 8, 16>}]} {
    %c0 = arith.constant 0 : index
    %c0_0 = arith.constant 0 : index
    %0 = vector.load %arg1[%c0, %c0_0] : memref<128x64xbf16, #tpu.memory_space<vmem>>, vector<128x64xbf16>
    %c0_1 = arith.constant 0 : index
    %c0_2 = arith.constant 0 : index
    %1 = vector.load %arg3[%c0_1, %c0_2] : memref<64x128xbf16, #tpu.memory_space<vmem>>, vector<64x128xbf16>
    %cst = arith.constant dense<0.000000e+00> : vector<128x128xf32>
    %2 = tpu.matmul %0, %1, %cst {dimension_numbers = #tpu.dot_dimension_numbers<[1], [0], [0], [1], [0, 0, 1, 1], [], []>} : vector<128x64xbf16>, vector<64x128xbf16>, vector<128x128xf32> -> vector<128x128xf32>
    %3 = vector.shape_cast %2 : vector<128x128xf32> to vector<8x16x128xf32>
    %c0_3 = arith.constant 0 : index
    %c0_4 = arith.constant 0 : index
    %4 = vector.load %arg2[%c0_3, %c0_4] : memref<8x128xf32, #tpu.memory_space<vmem>>, vector<8x128xf32>
    %5 = vector.shape_cast %4 : vector<8x128xf32> to vector<8x1x128xf32>
    %6 = vector.broadcast %5 : vector<8x1x128xf32> to vector<8x16x128xf32>
    %7 = arith.addf %3, %6 : vector<8x16x128xf32>
    %cst_5 = arith.constant 0.000000e+00 : f32
    %8 = vector.broadcast %cst_5 : f32 to vector<8x16x128xf32>
    %9 = arith.maximumf %7, %8 : vector<8x16x128xf32>
    %c0_6 = arith.constant 0 : index
    %c0_7 = arith.constant 0 : index
    %10 = vector.load %arg4[%c0_6, %c0_7] : memref<1x128xf32, #tpu.memory_space<vmem>>, vector<1x128xf32>
    %11 = vector.shape_cast %10 : vector<1x128xf32> to vector<1x1x128xf32>
    %12 = vector.broadcast %11 : vector<1x1x128xf32> to vector<8x16x128xf32>
    %13 = arith.mulf %9, %12 : vector<8x16x128xf32>
    %cst_8 = arith.constant dense<0.000000e+00> : vector<8x16xf32>
    %14 = vector.multi_reduction <add>, %13, %cst_8 [2] : vector<8x16x128xf32> to vector<8x16xf32>
    %15 = tpu.iota {dimensions = array<i32: 1>} : vector<1x16xi32>
    %c12_i32 = arith.constant 12 : i32
    %16 = vector.broadcast %c12_i32 : i32 to vector<1x16xi32>
    %17 = arith.cmpi slt, %15, %16 : vector<1x16xi32>
    %cst_9 = arith.constant -1.000000e+30 : f32
    %18 = vector.shape_cast %17 : vector<1x16xi1> to vector<1x16xi1>
    %19 = vector.broadcast %18 : vector<1x16xi1> to vector<8x16xi1>
    %20 = vector.broadcast %cst_9 : f32 to vector<8x16xf32>
    %21 = arith.select %19, %14, %20 : vector<8x16xi1>, vector<8x16xf32>
    %cst_10 = arith.constant dense<0xFF800000> : vector<8xf32>
    %22 = vector.multi_reduction <maximumf>, %21, %cst_10 [1] : vector<8x16xf32> to vector<8xf32>
    %23 = vector.shape_cast %22 : vector<8xf32> to vector<8x1xf32>
    %24 = vector.broadcast %23 : vector<8x1xf32> to vector<8x16xf32>
    %25 = arith.subf %21, %24 : vector<8x16xf32>
    %26 = math.exp %25 : vector<8x16xf32>
    %cst_11 = arith.constant dense<0.000000e+00> : vector<8xf32>
    %27 = vector.multi_reduction <add>, %26, %cst_11 [1] : vector<8x16xf32> to vector<8xf32>
    %28 = vector.shape_cast %27 : vector<8xf32> to vector<8x1xf32>
    %29 = tpu.reciprocal %28 {approx = true} : vector<8x1xf32> -> vector<8x1xf32>
    %30 = vector.broadcast %29 : vector<8x1xf32> to vector<8x16xf32>
    %31 = arith.mulf %26, %30 : vector<8x16xf32>
    %c0_12 = arith.constant 0 : index
    %c0_13 = arith.constant 0 : index
    %32 = vector.load %arg5[%c0_12, %c0_13] : memref<8x16xf32, #tpu.memory_space<vmem>>, vector<8x16xf32>
    tpu.vector_store %arg5[%c0_12, %c0_13], %31 {strides = array<i32>} : memref<8x16xf32, #tpu.memory_space<vmem>>, vector<8x16xf32>,
    return
  }
  func.func @transform_0(%arg0: i32) -> (i32, i32) {
    %c0_i32 = arith.constant 0 : i32
    %c0_i32_0 = arith.constant 0 : i32
    return %arg0, %c0_i32 : i32, i32
  }
  func.func @transform_1(%arg0: i32) -> (i32, i32) {
    %c0_i32 = arith.constant 0 : i32
    %c0_i32_0 = arith.constant 0 : i32
    return %arg0, %c0_i32 : i32, i32
  }
  func.func @transform_2(%arg0: i32) -> (i32, i32) {
    %c0_i32 = arith.constant 0 : i32
    %c0_i32_0 = arith.constant 0 : i32
    %c0_i32_1 = arith.constant 0 : i32
    return %c0_i32, %c0_i32_0 : i32, i32
  }
  func.func @transform_3(%arg0: i32) -> (i32, i32) {
    %c0_i32 = arith.constant 0 : i32
    %c0_i32_0 = arith.constant 0 : i32
    %c0_i32_1 = arith.constant 0 : i32
    return %c0_i32, %c0_i32_0 : i32, i32
  }
  func.func @transform_4(%arg0: i32) -> (i32, i32) {
    %c0_i32 = arith.constant 0 : i32
    %c0_i32_0 = arith.constant 0 : i32
    return %arg0, %c0_i32 : i32, i32
  }
}

</mosaic_0001>

<bundles_post_ra>
// kernel: tpu_custom_call.1
= control target key start
LH: loop header
LB: loop body
LE: loop exit
PB: predicated region body
PF: predicated region fallthrough
CT: control target
= control target key end

     0   :  { %s765_s15 = smov 0   ;;  %s863_s0 = inlined_call_operand.vmem [shape: bf16[512,64], index: 0, kind: input, shape index: {}]   ;;  %s864_s1 = inlined_call_operand.vmem [shape: f32[32,128], index: 1, kind: input, shape index: {}]   ;;  %s865_s2 = inlined_call_operand.vmem [shape: bf16[64,128], index: 2, kind: input, shape index: {}]   ;;  %s866_s3 = inlined_call_operand.vmem [shape: f32[1,128], index: 3, kind: input, shape index: {}]   ;;  %s867_s4 = inlined_call_operand.vmem [shape: f32[32,16], index: 4, kind: output, shape index: {}]  }
   0x1 LB: > { %s771_s16 = sadd.s32 4294967295, %s738_s15   ;;  %p632_p0 = scmp.ge.s32.totalorder %s738_s15, 1  ;;  %s738_s15 = sphi %s765_s15, %s14_s15  }
   0x2   : > { %p172_p1 = scmp.lt.s32.totalorder %s738_s15, 5 }
   0x4   : > { %p173_p2 = pnand %p632_p0, %p172_p1 }
   0x5   : > { %s633_s19 = sshll.u32 (!%p173_p2), %s771_s16, 4  ;;  %p207_p4 = scmp.lt.s32.totalorder (!%p173_p2), %s771_s16, 3 }
   0x6   : > { %176 = sbr.rel (%p173_p2) target bundleno = 585 (0x249), region = 36  ;;  %p202_p3 = scmp.lt.s32.totalorder (!%p173_p2), %s633_s19, 63 }
   0xb   : > { %v706_v0 = vld [vmem:[%s865_s2 + $0x18] sm:$0xff]  ;;  %v705_v1 = vld [vmem:[%s865_s2 + $0x10] sm:$0xff]  ;;  %s869_s19 = smov (!%p202_p3, %s633_s19), 63  ;;  %v704_v2 = vld [vmem:[%s865_s2 + $0x8] sm:$0xff]  ;;  %vm304_vm0 = vcmask 523264   ;;  %s871_s16 = smov (!%p207_p4, %s771_s16), 3 }
   0xc   : > { %333 = vmatpush.bf16.msra.mxu0 %v706_v0  ;;  %707 = vmatpush.bf16.msra.mxu1 %v706_v0  ;;  %s634_s24 = sshll.u32 %s869_s19, 2  ;;  %v703_v3 = vld [vmem:[%s865_s2] sm:$0xff]  ;;  %s635_s30 = sshll.u32 %s871_s16, 3  ;;  %vm511_vm1 = vcmask 130112   ;;  %vm534_vm2 = vcmask 1041409   ;;  %vm536_vm3 = vcmask 1042434  }
   0xd   : > { %708 = vmatpush.bf16.msra.mxu2 %v706_v0  ;;  %709 = vmatpush.bf16.msra.mxu3 %v706_v0  ;;  %s205_s29 = scalar_lea.vmem %s863_s0, %s634_s24  ;;  %s210_s7 = scalar_lea.vmem %s864_s1, %s635_s30  ;;  %v818_v22 = vld [vmem:[%s866_s3] ss:$0 sm:$0xff]  ;;  %vm538_vm4 = vcmask 1043459   ;;  %vm540_vm5 = vcmask 1044484   ;;  %vm542_vm6 = vcmask 1045509   ;;  %vm544_vm7 = vcmask 1046534  }
   0xe   : > { %v695_v4 = vld [vmem:[%s205_s29] sm:$0xff]  ;;  %v697_v5 = vld [vmem:[%s205_s29 + $0x10] sm:$0xff]  ;;  %v696_v8 = vld [vmem:[%s205_s29 + $0x8] sm:$0xff]  ;;  %vm546_vm8 = vcmask 1047559   ;;  %vm550_vm10 = vcmask 130048   ;;  %s214_s12 = scalar_lea.vmem %s867_s4, %s635_s30 }
   0xf   : > { %v699_v6 = vld [vmem:[%s205_s29 + $0x20] sm:$0xff]  ;;  %v701_v7 = vld [vmem:[%s205_s29 + $0x30] sm:$0xff]  ;;  %v698_v9 = vld [vmem:[%s205_s29 + $0x18] sm:$0xff] }
  0x10   : > { %334 = vmatpush.bf16.msra.mxu0 %v705_v1  ;;  %710 = vmatpush.bf16.msra.mxu1 %v705_v1  ;;  %v700_v10 = vld [vmem:[%s205_s29 + $0x28] sm:$0xff]  ;;  %v702_v11 = vld [vmem:[%s205_s29 + $0x38] sm:$0xff]  ;;  %v809_v12 = vld [vmem:[%s210_s7] sm:$0xff] }
  0x11   : > { %711 = vmatpush.bf16.msra.mxu2 %v705_v1  ;;  %712 = vmatpush.bf16.msra.mxu3 %v705_v1  ;;  %v381_v13 = vrot.slane %v809_v12, 2  ;;  %v387_v14 = vperm.slane %v809_v12, 0  ;;  %v383_v18 = vrot.slane %v809_v12, 4  ;;  %v385_v19 = vrot.slane %v809_v12, 6 }
  0x12   : > { %v380_v35 = vrot.slane %v809_v12, 1  ;;  %v384_v47 = vrot.slane %v809_v12, 5  ;;  %v382_v52 = vrot.slane %v809_v12, 3  ;;  %v386_v0 = vrot.slane %v809_v12, 7 }
  0x13   : > { %v389_v15 = vperm.slane %v381_v13, 0  ;;  %v391_v25 = vperm.slane %v383_v18, 0  ;;  %v820_v26 = vperm.slane %v385_v19, 0 }
  0x14   : > { %335 = vmatpush.bf16.msra.mxu0 %v704_v2  ;;  %713 = vmatpush.bf16.msra.mxu1 %v704_v2  ;;  %v388_v42 = vperm.slane %v380_v35, 0  ;;  %v392_v53 = vperm.slane %v384_v47, 0  ;;  %v390_v58 = vperm.slane %v382_v52, 0 }
  0x15   : > { %714 = vmatpush.bf16.msra.mxu2 %v704_v2  ;;  %715 = vmatpush.bf16.msra.mxu3 %v704_v2 }
  0x18   : > { %336 = vmatpush.bf16.msra.mxu0 %v703_v3  ;;  %716 = vmatpush.bf16.msra.mxu1 %v703_v3 }
  0x19   : > { %717 = vmatpush.bf16.msra.mxu2 %v703_v3  ;;  %718 = vmatpush.bf16.msra.mxu3 %v703_v3 }
  0x1b   : > { %685 = vmatmul.msk.bf16.vlgmr.msra.gmra.mxu0 %vm304_vm0, %v695_v4  ;;  %687 = vmatmul.msk.bf16.vlgmr.msra.gmra.mxu1 %vm304_vm0, %v697_v5 }
  0x1c   : > { %689 = vmatmul.msk.bf16.vlgmr.msra.gmra.mxu2 %vm304_vm0, %v699_v6  ;;  %691 = vmatmul.msk.bf16.vlgmr.msra.gmra.mxu3 %vm304_vm0, %v701_v7  ;;  %v394_v6 = vperm.slane %v386_v0, 0 }
  0x2b   : > { %686 = vmatmul.msk.bf16.gmra.mxu0 %vm304_vm0, %v696_v8  ;;  %688 = vmatmul.msk.bf16.gmra.mxu1 %vm304_vm0, %v698_v9 }
  0x2c   : > { %690 = vmatmul.msk.bf16.gmra.mxu2 %vm304_vm0, %v700_v10  ;;  %692 = vmatmul.msk.bf16.gmra.mxu3 %vm304_vm0, %v702_v11 }
  0x98   : > { %v338_v16 = vpop.f32.mrf.mxu0  ;;  %v348_v17 = vpop.f32.mrf.mxu1 }
  0x99   : > { %v403_v20 = vadd.f32 %v387_v14, %v338_v16  ;;  %v407_v21 = vadd.f32 %v389_v15, %v348_v17 }
  0x9b   : > { %v419_v23 = vmax.f32 %v403_v20, 0.0  ;;  %v423_v24 = vmax.f32 %v407_v21, 0.0 }
  0x9d   : > { %v443_v27 = vmul.f32 %v818_v22, %v423_v24  ;;  %v439_v28 = vmul.f32 %v818_v22, %v419_v23 }
  0x9f   : > { %v358_v29 = vpop.f32.mrf.mxu2  ;;  %463 = vadd.xlane.f32.xlu2 %v443_v27  ;;  %455 = vadd.xlane.f32.xlu0 %v439_v28  ;;  %v368_v30 = vpop.f32.mrf.mxu3 }
  0xa0   : > { %v411_v31 = vadd.f32 %v391_v25, %v358_v29  ;;  %v340_v32 = vpop.f32.mrf.mxu0  ;;  %v415_v33 = vadd.f32 %v820_v26, %v368_v30  ;;  %v350_v34 = vpop.f32.mrf.mxu1 }
  0xa1   : > { %v408_v38 = vadd.f32 %v389_v15, %v350_v34  ;;  %v404_v41 = vadd.f32 %v387_v14, %v340_v32 }
  0xa2   : > { %v427_v36 = vmax.f32 %v411_v31, 0.0  ;;  %v431_v37 = vmax.f32 %v415_v33, 0.0 }
  0xa3   : > { %v424_v44 = vmax.f32 %v408_v38, 0.0  ;;  %v420_v48 = vmax.f32 %v404_v41, 0.0 }
  0xa4   : > { %v447_v39 = vmul.f32 %v818_v22, %v427_v36  ;;  %v451_v40 = vmul.f32 %v818_v22, %v431_v37 }
  0xa5   : > { %v444_v51 = vmul.f32 %v818_v22, %v424_v44  ;;  %v440_v55 = vmul.f32 %v818_v22, %v420_v48 }
  0xa7   : > { %v360_v43 = vpop.f32.mrf.mxu2  ;;  %471 = vadd.xlane.f32.xlu2 %v447_v39  ;;  %479 = vadd.xlane.f32.xlu0 %v451_v40  ;;  %v370_v45 = vpop.f32.mrf.mxu3  ;;  %v487_v39 = vlaneseq }
  0xa8   : > { %v343_v46 = vpop.f32.mrf.mxu0  ;;  %v412_v54 = vadd.f32 %v391_v25, %v360_v43  ;;  %v353_v62 = vpop.f32.mrf.mxu1  ;;  %v416_v27 = vadd.f32 %v820_v26, %v370_v45 }
  0xa9   : > { %v405_v49 = vadd.f32 %v388_v42, %v343_v46  ;;  %v409_v2 = vadd.f32 %v390_v58, %v353_v62  ;;  %v488_v26 = vand.u32 127, %v487_v39 }
  0xaa   : > { %v428_v61 = vmax.f32 %v412_v54, 0.0  ;;  %v432_v29 = vmax.f32 %v416_v27, 0.0 }
  0xab   : > { %v421_v50 = vmax.f32 %v405_v49, 0.0  ;;  %v425_v7 = vmax.f32 %v409_v2, 0.0  ;;  %v509_v41 = vadd.s32 4294967288, %v488_v26  ;;  %vm489_vm9 = vcmp.lt.s32.totalorder %v488_v26, 12 }
  0xac   : > { %v448_v4 = vmul.f32 %v818_v22, %v428_v61  ;;  %v452_v30 = vmul.f32 %v818_v22, %v432_v29 }
  0xad   : > { %v441_v56 = vmul.f32 %v818_v22, %v421_v50  ;;  %v445_v12 = vmul.f32 %v818_v22, %v425_v7 }
  0xaf   : > { %v363_v57 = vpop.f32.mrf.mxu2  ;;  %465 = vadd.xlane.f32.xlu2 %v444_v51  ;;  %457 = vadd.xlane.f32.xlu0 %v440_v55  ;;  %v373_v59 = vpop.f32.mrf.mxu3 }
  0xb0   : > { %v413_v60 = vadd.f32 %v392_v53, %v363_v57  ;;  %459 = vadd.xlane.f32.xlu1 %v441_v56  ;;  %v345_v1 = vpop.f32.mrf.mxu0  ;;  %v417_v14 = vadd.f32 %v394_v6, %v373_v59  ;;  %v355_v15 = vpop.f32.mrf.mxu1 }
  0xb1   : > { %v406_v5 = vadd.f32 %v388_v42, %v345_v1  ;;  %v410_v18 = vadd.f32 %v390_v58, %v355_v15 }
  0xb2   : > { %v429_v63 = vmax.f32 %v413_v60, 0.0  ;;  %v433_v19 = vmax.f32 %v417_v14, 0.0 }
  0xb3   : > { %v422_v11 = vmax.f32 %v406_v5, 0.0  ;;  %v426_v23 = vmax.f32 %v410_v18, 0.0 }
  0xb4   : > { %v449_v3 = vmul.f32 %v818_v22, %v429_v63  ;;  %v453_v24 = vmul.f32 %v818_v22, %v433_v19 }
  0xb5   : > { %v442_v20 = vmul.f32 %v818_v22, %v422_v11  ;;  %v446_v28 = vmul.f32 %v818_v22, %v426_v23 }
  0xb7   : > { %v365_v8 = vpop.f32.mrf.mxu2  ;;  %473 = vadd.xlane.f32.xlu0 %v448_v4  ;;  %v375_v10 = vpop.f32.mrf.mxu3 }
  0xb8   : > { %v414_v9 = vadd.f32 %v392_v53, %v365_v8  ;;  %475 = vadd.xlane.f32.xlu1 %v449_v3  ;;  %v418_v16 = vadd.f32 %v394_v6, %v375_v10 }
  0xba   : > { %v430_v13 = vmax.f32 %v414_v9, 0.0  ;;  %v434_v21 = vmax.f32 %v418_v16, 0.0 }
  0xbc   : > { %v450_v17 = vmul.f32 %v818_v22, %v430_v13  ;;  %v454_v25 = vmul.f32 %v818_v22, %v434_v21 }
  0xbe   : > { %477 = vadd.xlane.f32.xlu2 %v450_v17 }
  0xbf   : > { %467 = vadd.xlane.f32.xlu0 %v445_v12 }
  0xc0   : > { %461 = vadd.xlane.f32.xlu1 %v442_v20 }
  0xc6   : > { %483 = vadd.xlane.f32.xlu2 %v453_v24 }
  0xc7   : > { %485 = vadd.xlane.f32.xlu0 %v454_v25 }
  0xc8   : > { %469 = vadd.xlane.f32.xlu1 %v446_v28 }
  0xd0   : > { %481 = vadd.xlane.f32.xlu1 %v452_v30 }
 0x112   : > { %v456_v31 = vpop.xlane.xlu0 %455  ;;  %v464_v33 = vpop.xlane.xlu2 %463 }
 0x113   : > { %v508_v47 = vperm.slane %v456_v31, %v488_v26  ;;  %v516_v49 = vperm.slane %v464_v33, %v488_v26 }
 0x11a   : > { %v480_v32 = vpop.xlane.xlu0 %479  ;;  %v472_v36 = vpop.xlane.xlu2 %471 }
 0x11b   : > { %v522_v60 = vperm.slane %v472_v36, %v488_v26  ;;  %v528_v7 = vperm.slane %v480_v32, %v488_v26 }
 0x122   : > { %v458_v34 = vpop.xlane.xlu0 %457  ;;  %v466_v40 = vpop.xlane.xlu2 %465 }
 0x123   : > { %v460_v35 = vpop.xlane.xlu1 %459  ;;  %v510_v45 = vperm.slane %v458_v34, %v509_v41  ;;  %v517_v50 = vperm.slane %v466_v40, %v509_v41 }
 0x124   : > { %v513_v46 = vperm.slane %v460_v35, %v488_v26 }
 0x125   : > { %v512_v51 = vsel %vm511_vm1, %v510_v45, %v508_v47  ;;  %v518_v56 = vsel %vm511_vm1, %v517_v50, %v516_v49 }
 0x12a   : > { %v474_v38 = vpop.xlane.xlu0 %473 }
 0x12b   : > { %v476_v37 = vpop.xlane.xlu1 %475  ;;  %v523_v57 = vperm.slane %v474_v38, %v509_v41 }
 0x12c   : > { %v525_v2 = vperm.slane %v476_v37, %v488_v26 }
 0x12d   : > { %v524_v1 = vsel %vm511_vm1, %v523_v57, %v522_v60 }
 0x131   : > { %v478_v22 = vpop.xlane.xlu2 %477 }
 0x132   : > { %v468_v44 = vpop.xlane.xlu0 %467  ;;  %v526_v0 = vperm.slane %v478_v22, %v509_v41 }
 0x133   : > { %v462_v42 = vpop.xlane.xlu1 %461  ;;  %v519_v53 = vperm.slane %v468_v44, %v488_v26 }
 0x134   : > { %v514_v43 = vperm.slane %v462_v42, %v509_v41  ;;  %v527_v9 = vsel %vm511_vm1, %v526_v0, %v525_v2 }
 0x136   : > { %v515_v48 = vsel %vm511_vm1, %v514_v43, %v513_v46 }
 0x137   : > { %v535_v54 = vsel %vm534_vm2, %v515_v48, %v512_v51 }
 0x138   : > { %v537_v59 = vsel %vm536_vm3, %v518_v56, %v535_v54 }
 0x139   : > { %v484_v62 = vpop.xlane.xlu2 %483 }
 0x13a   : > { %v486_v63 = vpop.xlane.xlu0 %485  ;;  %v531_v3 = vperm.slane %v484_v62, %v488_v26 }
 0x13b   : > { %v470_v52 = vpop.xlane.xlu1 %469  ;;  %v532_v4 = vperm.slane %v486_v63, %v509_v41 }
 0x13c   : > { %v520_v55 = vperm.slane %v470_v52, %v509_v41 }
 0x13d   : > { %v533_v13 = vsel %vm511_vm1, %v532_v4, %v531_v3 }
 0x13e   : > { %v521_v58 = vsel %vm511_vm1, %v520_v55, %v519_v53 }
 0x13f   : > { %v539_v61 = vsel %vm538_vm4, %v521_v58, %v537_v59 }
 0x140   : > { %v541_v6 = vsel %vm540_vm5, %v524_v1, %v539_v61 }
 0x141   : > { %v543_v11 = vsel %vm542_vm6, %v527_v9, %v541_v6 }
 0x143   : > { %v482_v5 = vpop.xlane.xlu1 %481 }
 0x144   : > { %v529_v8 = vperm.slane %v482_v5, %v509_v41 }
 0x146   : > { %v530_v10 = vsel %vm511_vm1, %v529_v8, %v528_v7 }
 0x147   : > { %v545_v14 = vsel %vm544_vm7, %v530_v10, %v543_v11 }
 0x148   : > { %v547_v15 = vsel %vm546_vm8, %v533_v13, %v545_v14 }
 0x149   : > { %v549_v12 = vsel %vm489_vm9, %v547_v15, -1e+30 }
 0x14a   : > { %v551_v16 = vsel %vm550_vm10, %v549_v12, -inf }
 0x14b   : > { %552 = vmax.xlane.f32.xlu1 %v551_v16 }
 0x1be   : > { %v553_v17 = vpop.xlane.xlu1 %552 }
 0x1bf   : > { %v554_v18 = vsub.f32 %v549_v12, %v553_v17 }
 0x1c1   : > { %v555_v19 = vmul.f32 1.442695, %v554_v18 }
 0x1c3   : > { %728 = vpow2.f32 %v555_v19 }
 0x1c9   : > { %v729_v20 = vpop.eup %728 }
 0x1ca   : > { %v557_v21 = vsel %vm550_vm10, %v729_v20, 0.0 }
 0x1cb   : > { %558 = vadd.xlane.f32.xlu2 %v557_v21 }
 0x23e   : > { %v559_v23 = vpop.xlane.xlu2 %558 }
 0x23f   : > { %730 = vrcp.f32 %v559_v23 }
 0x245   : > { %v731_v24 = vpop.eup %730 }
 0x246   : > { %v561_v25 = vmul.f32 %v731_v24, %v729_v20 }
 0x248   : > { %562 = vst.msk [vmem:[%s214_s12] sm:$0xff] %vm550_vm10, %v561_v25 }
 0x249 PF: > { %s14_s15 = sadd.s32 1, %s738_s15  }
 0x24a   : > { %p11_p5 = scmp.ge.s32.totalorder %s14_s15, 6  }
 0x24c   :  { %13 = sbr.rel (!%p11_p5) target bundleno = 1 (0x1), region = 69 }

</bundles_post_ra>
